<compile_context>
chip_gen: v6e
topology: v6e:2x2x1
jax: 0.10.0
libtpu: 0.0.40
codegen_flags: <defaults>
</compile_context>

<pallas_src>
import functools
import math

import jax
import jax.numpy as jnp
from jax.experimental import pallas as pl
from jax.experimental.pallas import tpu as pltpu


# -----------------------------------------------------------------------------
# Kernel
# -----------------------------------------------------------------------------
def _pointset_cnn_kernel(tile_rows, group, n_true, inv_n, needs_mask,
                         x_ref,                      # (1, tile_rows, L)   f32
                         w1_ref, t1_ref,             # (L, G*C1) bf16, (1, G*C1) f32
                         w2_ref, t2_ref,             # (G*C1, G*C2) f32, (1, G*C2) f32
                         fold_ref,                   # (G*C2, C2) f32  group-fold matrix
                         wh1_ref, th1_ref,           # (C2, H0), (1, H0)
                         wh2_ref, th2_ref,           # (H0, 1), (1, 1)
                         grp_ref,                    # (1, G*C2) int32  lane -> point group
                         out_ref,                    # (1, 8, 128) f32
                         acc_ref):                   # (1, G*C2) f32 running pooled sum
    nt = pl.program_id(1)

    @pl.when(nt == 0)
    def _init():
        acc_ref[...] = jnp.zeros_like(acc_ref)

    # --- per-point MLP (rFF); G points packed per lane-dense row -----------------
    xb = x_ref[0].astype(jnp.bfloat16)                                   # (rows, L)
    h = jnp.dot(xb, w1_ref[...], preferred_element_type=jnp.float32)     # (rows, G*C1)
    h = jnp.maximum(h + t1_ref[...], 0.0)        # fused conv-bias + BN shift, ReLU
    h = jnp.dot(h, w2_ref[...], preferred_element_type=jnp.float32)      # (rows, G*C2)
    h = jnp.maximum(h + t2_ref[...], 0.0)        # BN shift + outer ReLU (leaf_probs)

    # --- mask padded tail points (zero-padded x is NOT zero after ReLU(+shift)) --
    if needs_mask:
        rows = jax.lax.broadcasted_iota(jnp.int32, h.shape, 0)
        point = (nt * tile_rows + rows) * group + grp_ref[...]
        h = jnp.where(point < n_true, h, 0.0)

    # --- running per-batch sum over points (sublane reduction -> tiny accumulator)
    acc_ref[...] += jnp.sum(h, axis=0, keepdims=True)                    # (1, G*C2)

    # --- fold point groups, head + sigmoid: once per batch, on the last tile -----
    @pl.when(nt == pl.num_programs(1) - 1)
    def _finalize():
        pooled = jnp.dot(acc_ref[...], fold_ref[...],
                         preferred_element_type=jnp.float32) * inv_n     # (1, C2) mean
        g = jnp.dot(pooled, wh1_ref[...], preferred_element_type=jnp.float32)
        g = jnp.maximum(g + th1_ref[...], 0.0)                           # (1, H0)
        o = jnp.dot(g, wh2_ref[...], preferred_element_type=jnp.float32) + th2_ref[...]
        out_ref[0] = jnp.broadcast_to(jax.nn.sigmoid(o), (8, 128))       # unmasked store


# -----------------------------------------------------------------------------
# Wrapper
# -----------------------------------------------------------------------------
def _round_up(a, b):
    return ((a + b - 1) // b) * b


def _choose_tile_rows(r_needed, lane_width, max_tile_points, group, budget_bytes):
    """Rows per point tile (multiple of 8), sized against a VMEM budget."""
    # per-row VMEM estimate: double-buffered f32 x tile + in-kernel bf16 copy of x
    # + a few lane-padded f32 intermediates (h1 / h2 / mask temporaries).
    per_row = 2 * lane_width * 4 + lane_width * 2 + 3 * max(lane_width, 128) * 4
    cap = min(budget_bytes // per_row, max(max_tile_points // group, 8))
    cap = max((cap // 8) * 8, 8)
    return int(min(cap, _round_up(r_needed, 8)))


def pointset_cnn_forward(x, kp, *, max_tile_points=65536,
                         vmem_budget_bytes=30 * 1024 * 1024):
    """x: (B, N, F) float32  ->  pred: (B,) float32 (matches head Flatten(0))."""
    B, N, F = x.shape
    C1 = kp["w1"].shape[1]
    C2 = kp["w2"].shape[1]
    H0 = kp["wh1"].shape[1]
    f32 = jnp.float32

    # Lane-dense, zero-copy layout: pack G points per row so the last dim G*F is a
    # multiple of 128 (row-major reshape is metadata-only; no host transpose/cast).
    G = 128 // math.gcd(F, 128)
    L = G * F

    r_needed = -(-N // G)                                   # ceil(N / G)
    tile_rows = _choose_tile_rows(r_needed, L, max_tile_points, G, vmem_budget_bytes)
    r_pad = _round_up(r_needed, tile_rows)
    n_pad = r_pad * G
    n_tiles = r_pad // tile_rows
    needs_mask = (n_pad != N)

    if n_pad != N:                                          # only for ragged N
        x = jnp.pad(x, ((0, 0), (0, n_pad - N), (0, 0)))
    x_r = x.reshape(B, r_pad, L)                            # free when no pad needed

    # Block-diagonal / tiled weights (BN already folded in kp; all tiny).
    eye_g = jnp.eye(G, dtype=f32)
    w1_bd = jnp.kron(eye_g, kp["w1"]).astype(jnp.bfloat16)              # (L, G*C1)
    t1_t = jnp.tile(kp["t1"], G)[None, :].astype(f32)                   # (1, G*C1)
    w2_bd = jnp.kron(eye_g, kp["w2"]).astype(f32)                       # (G*C1, G*C2)
    t2_t = jnp.tile(kp["t2"], G)[None, :].astype(f32)                   # (1, G*C2)
    fold = jnp.kron(jnp.ones((G, 1), f32), jnp.eye(C2, dtype=f32))      # (G*C2, C2)
    wh1 = kp["wh1"].astype(f32)
    th1 = kp["th1"][None, :].astype(f32)
    wh2 = kp["wh2"].astype(f32)
    th2 = kp["th2"][None, :].astype(f32)                                # (1, 1)
    lane_grp = jnp.repeat(jnp.arange(G, dtype=jnp.int32), C2)[None, :]  # (1, G*C2)

    weights = (w1_bd, t1_t, w2_bd, t2_t, fold, wh1, th1, wh2, th2, lane_grp)

    def const_spec(a):               # tiny weights: VMEM-resident block, never re-DMA'd
        nd = a.ndim
        return pl.BlockSpec(a.shape, lambda b, n, _nd=nd: (0,) * _nd)

    in_specs = [pl.BlockSpec((1, tile_rows, L), lambda b, n: (b, n, 0))]
    in_specs += [const_spec(a) for a in weights]
    out_specs = pl.BlockSpec((1, 8, 128), lambda b, n: (b, 0, 0))

    # Generation-aware VMEM limit: derived from the tile, capped under v7x's 64 MiB.
    est = (2 * tile_rows * L * 4 + tile_rows * L * 2
           + 3 * tile_rows * max(L, 128) * 4 + (2 << 20))
    vmem_limit = int(min(max(est, 16 * 1024 * 1024), 48 * 1024 * 1024))

    kernel = functools.partial(_pointset_cnn_kernel,
                               tile_rows, G, N, 1.0 / N, needs_mask)

    out = pl.pallas_call(
        kernel,
        out_shape=jax.ShapeDtypeStruct((B, 8, 128), jnp.float32),
        grid_spec=pltpu.PrefetchScalarGridSpec(
            num_scalar_prefetch=0,
            grid=(B, n_tiles),
            in_specs=in_specs,
            out_specs=out_specs,
            scratch_shapes=[pltpu.VMEM((1, G * C2), jnp.float32)],
        ),
        compiler_params=pltpu.CompilerParams(
            dimension_semantics=("parallel", "arbitrary"),
            vmem_limit_bytes=vmem_limit,
        ),
    )(x_r, *weights)
    return out[:, 0, 0]


# -----------------------------------------------------------------------------
# Parameters
# -----------------------------------------------------------------------------
def make_params(num_features, architecture=(3, 3), head_arch=(3, 1), seed=0):
    """Raw (unfused) parameters mirroring PointSetCNN with dropout_rate=None."""
    assert len(architecture) == 2 and len(head_arch) == 2
    C1, C2 = architecture
    H0 = head_arch[0]
    keys = jax.random.split(jax.random.PRNGKey(seed), 24)
    k = iter(keys)

    def nrm(shape, s=0.5):
        return (s * jax.random.normal(next(k), shape)).astype(jnp.float32)

    def pos(shape):
        return (jnp.abs(jax.random.normal(next(k), shape)) + 0.5).astype(jnp.float32)

    return dict(
        # Conv2d(1, C1, (1, F)): torch weight (C1,1,1,F) stored as matmul weight (F, C1)
        w1=nrm((num_features, C1)), b1=nrm((C1,)),
        g1=1.0 + nrm((C1,)), be1=nrm((C1,)), m1=nrm((C1,)), v1=pos((C1,)),
        # Conv2d(C1, C2, (1, 1)): torch weight (C2,C1,1,1) stored as (C1, C2)
        w2=nrm((C1, C2)), b2=nrm((C2,)),
        g2=1.0 + nrm((C2,)), be2=nrm((C2,)), m2=nrm((C2,)), v2=pos((C2,)),
        # Linear(C2, H0): torch weight (H0, C2) stored as (C2, H0)
        wh1=nrm((C2, H0)), bh1=nrm((H0,)),
        gh1=1.0 + nrm((H0,)), beh1=nrm((H0,)), mh1=nrm((H0,)), vh1=pos((H0,)),
        # Linear(H0, 1)
        wh2=nrm((H0, 1)), bh2=nrm((1,)),
        gh2=1.0 + nrm((1,)), beh2=nrm((1,)), mh2=nrm((1,)), vh2=pos((1,)),
    )


def prepare_kernel_params(raw, eps=1e-5):
    """Fold eval-mode BN into the preceding weight (scale) + shift ((in, out) layout)."""
    def fold(w, b, g, be, m, v):
        scale = g / jnp.sqrt(v + eps)
        return ((w * scale[None, :]).astype(jnp.float32),
                ((b - m) * scale + be).astype(jnp.float32))

    w1, t1 = fold(raw["w1"], raw["b1"], raw["g1"], raw["be1"], raw["m1"], raw["v1"])
    w2, t2 = fold(raw["w2"], raw["b2"], raw["g2"], raw["be2"], raw["m2"], raw["v2"])
    wh1, th1 = fold(raw["wh1"], raw["bh1"], raw["gh1"], raw["beh1"], raw["mh1"], raw["vh1"])
    wh2, th2 = fold(raw["wh2"], raw["bh2"], raw["gh2"], raw["beh2"], raw["mh2"], raw["vh2"])
    return dict(w1=w1, t1=t1, w2=w2, t2=t2, wh1=wh1, th1=th1, wh2=wh2, th2=th2)


# -----------------------------------------------------------------------------
# References
# -----------------------------------------------------------------------------
def pointset_cnn_reference_fused(x, kp):
    """Plain-JAX mirror of the kernel math (fused BN, same bf16 rounding of x/W1)."""
    B, N, F = x.shape
    hi = jax.lax.Precision.HIGHEST
    xb = x.astype(jnp.bfloat16).reshape(B * N, F)
    h = jnp.dot(xb, kp["w1"].astype(jnp.bfloat16), preferred_element_type=jnp.float32)
    h = jnp.maximum(h + kp["t1"][None, :], 0.0)
    h = jnp.maximum(jnp.dot(h, kp["w2"], precision=hi) + kp["t2"][None, :], 0.0)
    pooled = h.reshape(B, N, -1).mean(axis=1)
    g = jnp.maximum(jnp.dot(pooled, kp["wh1"], precision=hi) + kp["th1"][None, :], 0.0)
    o = jnp.dot(g, kp["wh2"], precision=hi) + kp["th2"][None, :]
    return jax.nn.sigmoid(o).reshape(B)


def pointset_cnn_reference(x, raw, eps=1e-5):
    """Module-faithful f32 reference of PointSetCNN.forward (eval-mode BN)."""
    B, N, F = x.shape

    def bn(y, g, be, m, v):
        return (y - m) * (g / jnp.sqrt(v + eps)) + be

    h = x.reshape(B * N, F) @ raw["w1"] + raw["b1"]
    h = jnp.maximum(bn(h, raw["g1"], raw["be1"], raw["m1"], raw["v1"]), 0.0)
    h = h @ raw["w2"] + raw["b2"]
    h = jnp.maximum(bn(h, raw["g2"], raw["be2"], raw["m2"], raw["v2"]), 0.0)
    pooled = h.reshape(B, N, -1).mean(axis=1)
    g = pooled @ raw["wh1"] + raw["bh1"]
    g = jnp.maximum(bn(g, raw["gh1"], raw["beh1"], raw["mh1"], raw["vh1"]), 0.0)
    g = g @ raw["wh2"] + raw["bh2"]
    g = bn(g, raw["gh2"], raw["beh2"], raw["mh2"], raw["vh2"])
    return jax.nn.sigmoid(g).reshape(B)


# -----------------------------------------------------------------------------
# Demo / self-check
# -----------------------------------------------------------------------------
if __name__ == "__main__":
    B, N, F = 2, 512, 16           # batch, points per set, features per point
    raw = make_params(num_features=F, architecture=(3, 3), head_arch=(3, 1), seed=0)
    kp = prepare_kernel_params(raw)

    k0, k1 = jax.random.split(jax.random.PRNGKey(0))
    x = jax.random.normal(k0, (B, N, F), jnp.float32)

    # (1) multi-tile accumulation path: 128 points per tile -> 4 point tiles / batch.
    fwd_small = jax.jit(functools.partial(pointset_cnn_forward, max_tile_points=128))
    pred = jax.block_until_ready(fwd_small(x, kp))
    assert pred.shape == (B,)
    ref_tight = pointset_cnn_reference_fused(x, kp)      # same bf16 rounding
    ref_full = pointset_cnn_reference(x, raw)            # f32, unfused BN
    assert jnp.allclose(pred, ref_tight, atol=5e-3, rtol=5e-3), (pred, ref_tight)
    assert jnp.allclose(pred, ref_full, atol=2e-2, rtol=2e-2), (pred, ref_full)

    # (2) ragged-N path (padding + in-kernel tail mask), default (large) tiling.
    N2 = 500
    x2 = jax.random.normal(k1, (B, N2, F), jnp.float32)
    fwd = jax.jit(pointset_cnn_forward)
    pred2 = jax.block_until_ready(fwd(x2, kp))
    assert pred2.shape == (B,)
    ref2_tight = pointset_cnn_reference_fused(x2, kp)
    ref2_full = pointset_cnn_reference(x2, raw)
    assert jnp.allclose(pred2, ref2_tight, atol=5e-3, rtol=5e-3), (pred2, ref2_tight)
    assert jnp.allclose(pred2, ref2_full, atol=2e-2, rtol=2e-2), (pred2, ref2_full)

    print("KERNEL_OK")
</pallas_src>

<mosaic_0001>
module attributes {stable_mosaic.version = 11 : i64} {
  func.func @_pointset_cnn_kernel(%arg0: i32, %arg1: i32, %arg2: memref<1x16x128xf32, #tpu.memory_space<vmem>>, %arg3: memref<128x24xbf16, #tpu.memory_space<vmem>>, %arg4: memref<1x24xf32, #tpu.memory_space<vmem>>, %arg5: memref<24x24xf32, #tpu.memory_space<vmem>>, %arg6: memref<1x24xf32, #tpu.memory_space<vmem>>, %arg7: memref<24x3xf32, #tpu.memory_space<vmem>>, %arg8: memref<3x3xf32, #tpu.memory_space<vmem>>, %arg9: memref<1x3xf32, #tpu.memory_space<vmem>>, %arg10: memref<3x1xf32, #tpu.memory_space<vmem>>, %arg11: memref<1x1xf32, #tpu.memory_space<vmem>>, %arg12: memref<1x24xi32, #tpu.memory_space<vmem>>, %arg13: memref<1x8x128xf32, #tpu.memory_space<vmem>>, %arg14: memref<1x24xf32, #tpu.memory_space<vmem>>) attributes {dimension_semantics = [#tpu.dimension_semantics<parallel>, #tpu.dimension_semantics<arbitrary>], iteration_bounds = array<i64: 2, 4>, scalar_prefetch = 0 : i64, scratch_operands = 1 : i64, tpu.core_type = #tpu.core_type<tc>, window_params = [{transform_indices = @transform_0, window_bounds = array<i64: 1, 16, 128>}, {pipeline_mode = #tpu.pipeline_mode<synchronous>, transform_indices = @transform_1, window_bounds = array<i64: 128, 24>}, {pipeline_mode = #tpu.pipeline_mode<synchronous>, transform_indices = @transform_2, window_bounds = array<i64: 1, 24>}, {pipeline_mode = #tpu.pipeline_mode<synchronous>, transform_indices = @transform_3, window_bounds = array<i64: 24, 24>}, {pipeline_mode = #tpu.pipeline_mode<synchronous>, transform_indices = @transform_4, window_bounds = array<i64: 1, 24>}, {pipeline_mode = #tpu.pipeline_mode<synchronous>, transform_indices = @transform_5, window_bounds = array<i64: 24, 3>}, {pipeline_mode = #tpu.pipeline_mode<synchronous>, transform_indices = @transform_6, window_bounds = array<i64: 3, 3>}, {pipeline_mode = #tpu.pipeline_mode<synchronous>, transform_indices = @transform_7, window_bounds = array<i64: 1, 3>}, {pipeline_mode = #tpu.pipeline_mode<synchronous>, transform_indices = @transform_8, window_bounds = array<i64: 3, 1>}, {pipeline_mode = #tpu.pipeline_mode<synchronous>, transform_indices = @transform_9, window_bounds = array<i64: 1, 1>}, {pipeline_mode = #tpu.pipeline_mode<synchronous>, transform_indices = @transform_10, window_bounds = array<i64: 1, 24>}, {transform_indices = @transform_11, window_bounds = array<i64: 1, 8, 128>}]} {
    %c0_i32 = arith.constant 0 : i32
    %0 = arith.cmpi eq, %arg1, %c0_i32 : i32
    %1 = arith.extui %0 : i1 to i32
    %c0_i32_0 = arith.constant 0 : i32
    %2 = arith.cmpi ne, %1, %c0_i32_0 : i32
    scf.if %2 {
      %cst_20 = arith.constant 0.000000e+00 : f32
      %28 = vector.broadcast %cst_20 : f32 to vector<1x24xf32>
      %c0_21 = arith.constant 0 : index
      %c0_22 = arith.constant 0 : index
      %29 = vector.load %arg14[%c0_21, %c0_22] : memref<1x24xf32, #tpu.memory_space<vmem>>, vector<1x24xf32>
      tpu.vector_store %arg14[%c0_21, %c0_22], %28 {strides = array<i32>} : memref<1x24xf32, #tpu.memory_space<vmem>>, vector<1x24xf32>,
    } else {
    }
    %c0 = arith.constant 0 : index
    %c0_1 = arith.constant 0 : index
    %c0_2 = arith.constant 0 : index
    %3 = vector.load %arg2[%c0, %c0_1, %c0_2] : memref<1x16x128xf32, #tpu.memory_space<vmem>>, vector<1x16x128xf32>
    %4 = vector.shape_cast %3 : vector<1x16x128xf32> to vector<16x128xf32>
    %5 = arith.truncf %4 : vector<16x128xf32> to vector<16x128xbf16>
    %c0_3 = arith.constant 0 : index
    %c0_4 = arith.constant 0 : index
    %6 = vector.load %arg3[%c0_3, %c0_4] : memref<128x24xbf16, #tpu.memory_space<vmem>>, vector<128x24xbf16>
    %cst = arith.constant dense<0.000000e+00> : vector<16x24xf32>
    %7 = tpu.matmul %5, %6, %cst {dimension_numbers = #tpu.dot_dimension_numbers<[1], [0], [0], [1], [0, 0, 1, 1], [], []>} : vector<16x128xbf16>, vector<128x24xbf16>, vector<16x24xf32> -> vector<16x24xf32>
    %c0_5 = arith.constant 0 : index
    %c0_6 = arith.constant 0 : index
    %8 = vector.load %arg4[%c0_5, %c0_6] : memref<1x24xf32, #tpu.memory_space<vmem>>, vector<1x24xf32>
    %9 = vector.broadcast %8 : vector<1x24xf32> to vector<16x24xf32>
    %10 = arith.addf %7, %9 : vector<16x24xf32>
    %cst_7 = arith.constant 0.000000e+00 : f32
    %11 = vector.broadcast %cst_7 : f32 to vector<16x24xf32>
    %12 = arith.maximumf %10, %11 : vector<16x24xf32>
    %c0_8 = arith.constant 0 : index
    %c0_9 = arith.constant 0 : index
    %13 = vector.load %arg5[%c0_8, %c0_9] : memref<24x24xf32, #tpu.memory_space<vmem>>, vector<24x24xf32>
    %cst_10 = arith.constant dense<0.000000e+00> : vector<16x24xf32>
    %14 = tpu.matmul %12, %13, %cst_10 {dimension_numbers = #tpu.dot_dimension_numbers<[1], [0], [0], [1], [0, 0, 1, 1], [], []>} : vector<16x24xf32>, vector<24x24xf32>, vector<16x24xf32> -> vector<16x24xf32>
    %c0_11 = arith.constant 0 : index
    %c0_12 = arith.constant 0 : index
    %15 = vector.load %arg6[%c0_11, %c0_12] : memref<1x24xf32, #tpu.memory_space<vmem>>, vector<1x24xf32>
    %16 = vector.broadcast %15 : vector<1x24xf32> to vector<16x24xf32>
    %17 = arith.addf %14, %16 : vector<16x24xf32>
    %cst_13 = arith.constant 0.000000e+00 : f32
    %18 = vector.broadcast %cst_13 : f32 to vector<16x24xf32>
    %19 = arith.maximumf %17, %18 : vector<16x24xf32>
    %c0_14 = arith.constant 0 : index
    %c0_15 = arith.constant 0 : index
    %20 = vector.load %arg14[%c0_14, %c0_15] : memref<1x24xf32, #tpu.memory_space<vmem>>, vector<1x24xf32>
    %cst_16 = arith.constant dense<0.000000e+00> : vector<24xf32>
    %21 = vector.multi_reduction <add>, %19, %cst_16 [0] : vector<16x24xf32> to vector<24xf32>
    %22 = vector.shape_cast %21 : vector<24xf32> to vector<1x24xf32>
    %23 = arith.addf %20, %22 : vector<1x24xf32>
    %c0_17 = arith.constant 0 : index
    %c0_18 = arith.constant 0 : index
    %24 = vector.load %arg14[%c0_17, %c0_18] : memref<1x24xf32, #tpu.memory_space<vmem>>, vector<1x24xf32>
    tpu.vector_store %arg14[%c0_17, %c0_18], %23 {strides = array<i32>} : memref<1x24xf32, #tpu.memory_space<vmem>>, vector<1x24xf32>,
    %c3_i32 = arith.constant 3 : i32
    %25 = arith.cmpi eq, %arg1, %c3_i32 : i32
    %26 = arith.extui %25 : i1 to i32
    %c0_i32_19 = arith.constant 0 : i32
    %27 = arith.cmpi ne, %26, %c0_i32_19 : i32
    scf.if %27 {
      %c0_20 = arith.constant 0 : index
      %c0_21 = arith.constant 0 : index
      %28 = vector.load %arg14[%c0_20, %c0_21] : memref<1x24xf32, #tpu.memory_space<vmem>>, vector<1x24xf32>
      %c0_22 = arith.constant 0 : index
      %c0_23 = arith.constant 0 : index
      %29 = vector.load %arg7[%c0_22, %c0_23] : memref<24x3xf32, #tpu.memory_space<vmem>>, vector<24x3xf32>
      %cst_24 = arith.constant dense<0.000000e+00> : vector<1x3xf32>
      %30 = tpu.matmul %28, %29, %cst_24 {dimension_numbers = #tpu.dot_dimension_numbers<[1], [0], [0], [1], [0, 0, 1, 1], [], []>} : vector<1x24xf32>, vector<24x3xf32>, vector<1x3xf32> -> vector<1x3xf32>
      %cst_25 = arith.constant 0.001953125 : f32
      %31 = vector.broadcast %cst_25 : f32 to vector<1x3xf32>
      %32 = arith.mulf %30, %31 : vector<1x3xf32>
      %c0_26 = arith.constant 0 : index
      %c0_27 = arith.constant 0 : index
      %33 = vector.load %arg8[%c0_26, %c0_27] : memref<3x3xf32, #tpu.memory_space<vmem>>, vector<3x3xf32>
      %cst_28 = arith.constant dense<0.000000e+00> : vector<1x3xf32>
      %34 = tpu.matmul %32, %33, %cst_28 {dimension_numbers = #tpu.dot_dimension_numbers<[1], [0], [0], [1], [0, 0, 1, 1], [], []>} : vector<1x3xf32>, vector<3x3xf32>, vector<1x3xf32> -> vector<1x3xf32>
      %c0_29 = arith.constant 0 : index
      %c0_30 = arith.constant 0 : index
      %35 = vector.load %arg9[%c0_29, %c0_30] : memref<1x3xf32, #tpu.memory_space<vmem>>, vector<1x3xf32>
      %36 = arith.addf %34, %35 : vector<1x3xf32>
      %cst_31 = arith.constant 0.000000e+00 : f32
      %37 = vector.broadcast %cst_31 : f32 to vector<1x3xf32>
      %38 = arith.maximumf %36, %37 : vector<1x3xf32>
      %c0_32 = arith.constant 0 : index
      %c0_33 = arith.constant 0 : index
      %39 = vector.load %arg10[%c0_32, %c0_33] : memref<3x1xf32, #tpu.memory_space<vmem>>, vector<3x1xf32>
      %cst_34 = arith.constant dense<0.000000e+00> : vector<1x1xf32>
      %40 = tpu.matmul %38, %39, %cst_34 {dimension_numbers = #tpu.dot_dimension_numbers<[1], [0], [0], [1], [0, 0, 1, 1], [], []>} : vector<1x3xf32>, vector<3x1xf32>, vector<1x1xf32> -> vector<1x1xf32>
      %c0_35 = arith.constant 0 : index
      %c0_36 = arith.constant 0 : index
      %41 = vector.load %arg11[%c0_35, %c0_36] : memref<1x1xf32, #tpu.memory_space<vmem>>, vector<1x1xf32>
      %42 = arith.addf %40, %41 : vector<1x1xf32>
      %43 = arith.negf %42 : vector<1x1xf32>
      %44 = math.exp %43 : vector<1x1xf32>
      %cst_37 = arith.constant 1.000000e+00 : f32
      %45 = vector.broadcast %cst_37 : f32 to vector<1x1xf32>
      %46 = arith.addf %45, %44 : vector<1x1xf32>
      %47 = arith.divf %45, %46 : vector<1x1xf32>
      %48 = vector.shape_cast %47 : vector<1x1xf32> to vector<1x1xf32>
      %49 = vector.broadcast %48 : vector<1x1xf32> to vector<8x128xf32>
      %c0_38 = arith.constant 0 : index
      %c0_39 = arith.constant 0 : index
      %c0_40 = arith.constant 0 : index
      %50 = vector.load %arg13[%c0_38, %c0_39, %c0_40] : memref<1x8x128xf32, #tpu.memory_space<vmem>>, vector<1x8x128xf32>
      %51 = vector.shape_cast %50 : vector<1x8x128xf32> to vector<8x128xf32>
      %52 = vector.shape_cast %49 : vector<8x128xf32> to vector<1x8x128xf32>
      tpu.vector_store %arg13[%c0_38, %c0_39, %c0_40], %52 {strides = array<i32>} : memref<1x8x128xf32, #tpu.memory_space<vmem>>, vector<1x8x128xf32>,
    } else {
    }
    return
  }
  func.func @transform_0(%arg0: i32, %arg1: i32) -> (i32, i32, i32) {
    %c0_i32 = arith.constant 0 : i32
    %c0_i32_0 = arith.constant 0 : i32
    return %arg0, %arg1, %c0_i32 : i32, i32, i32
  }
  func.func @transform_1(%arg0: i32, %arg1: i32) -> (i32, i32) {
    %c0_i32 = arith.constant 0 : i32
    %c0_i32_0 = arith.constant 0 : i32
    %c0_i32_1 = arith.constant 0 : i32
    return %c0_i32, %c0_i32_0 : i32, i32
  }
  func.func @transform_2(%arg0: i32, %arg1: i32) -> (i32, i32) {
    %c0_i32 = arith.constant 0 : i32
    %c0_i32_0 = arith.constant 0 : i32
    %c0_i32_1 = arith.constant 0 : i32
    return %c0_i32, %c0_i32_0 : i32, i32
  }
  func.func @transform_3(%arg0: i32, %arg1: i32) -> (i32, i32) {
    %c0_i32 = arith.constant 0 : i32
    %c0_i32_0 = arith.constant 0 : i32
    %c0_i32_1 = arith.constant 0 : i32
    return %c0_i32, %c0_i32_0 : i32, i32
  }
  func.func @transform_4(%arg0: i32, %arg1: i32) -> (i32, i32) {
    %c0_i32 = arith.constant 0 : i32
    %c0_i32_0 = arith.constant 0 : i32
    %c0_i32_1 = arith.constant 0 : i32
    return %c0_i32, %c0_i32_0 : i32, i32
  }
  func.func @transform_5(%arg0: i32, %arg1: i32) -> (i32, i32) {
    %c0_i32 = arith.constant 0 : i32
    %c0_i32_0 = arith.constant 0 : i32
    %c0_i32_1 = arith.constant 0 : i32
    return %c0_i32, %c0_i32_0 : i32, i32
  }
  func.func @transform_6(%arg0: i32, %arg1: i32) -> (i32, i32) {
    %c0_i32 = arith.constant 0 : i32
    %c0_i32_0 = arith.constant 0 : i32
    %c0_i32_1 = arith.constant 0 : i32
    return %c0_i32, %c0_i32_0 : i32, i32
  }
  func.func @transform_7(%arg0: i32, %arg1: i32) -> (i32, i32) {
    %c0_i32 = arith.constant 0 : i32
    %c0_i32_0 = arith.constant 0 : i32
    %c0_i32_1 = arith.constant 0 : i32
    return %c0_i32, %c0_i32_0 : i32, i32
  }
  func.func @transform_8(%arg0: i32, %arg1: i32) -> (i32, i32) {
    %c0_i32 = arith.constant 0 : i32
    %c0_i32_0 = arith.constant 0 : i32
    %c0_i32_1 = arith.constant 0 : i32
    return %c0_i32, %c0_i32_0 : i32, i32
  }
  func.func @transform_9(%arg0: i32, %arg1: i32) -> (i32, i32) {
    %c0_i32 = arith.constant 0 : i32
    %c0_i32_0 = arith.constant 0 : i32
    %c0_i32_1 = arith.constant 0 : i32
    return %c0_i32, %c0_i32_0 : i32, i32
  }
  func.func @transform_10(%arg0: i32, %arg1: i32) -> (i32, i32) {
    %c0_i32 = arith.constant 0 : i32
    %c0_i32_0 = arith.constant 0 : i32
    %c0_i32_1 = arith.constant 0 : i32
    return %c0_i32, %c0_i32_0 : i32, i32
  }
  func.func @transform_11(%arg0: i32, %arg1: i32) -> (i32, i32, i32) {
    %c0_i32 = arith.constant 0 : i32
    %c0_i32_0 = arith.constant 0 : i32
    %c0_i32_1 = arith.constant 0 : i32
    return %arg0, %c0_i32, %c0_i32_0 : i32, i32, i32
  }
}

</mosaic_0001>

<bundles_post_ra>
// kernel: tile.13
= control target key start
LH: loop header
LB: loop body
LE: loop exit
PB: predicated region body
PF: predicated region fallthrough
CT: control target
= control target key end

     0   :  { %s22_s0 = inlined_call_operand.vmem [shape: f32[3], index: 0, kind: input, shape index: {}]   ;;  %s23_s1 = inlined_call_operand.vmem [shape: f32[8,3], index: 1, kind: output, shape index: {}]  }
   0x1   :  { %v4_v0 = vld [vmem:[%s22_s0] ss:$0 sm:$0xff] }
   0x2   :  { %5 = vst [vmem:[%s23_s1] sm:$0xff] %v4_v0 }

// kernel: tile.14
= control target key start
LH: loop header
LB: loop body
LE: loop exit
PB: predicated region body
PF: predicated region fallthrough
CT: control target
= control target key end

     0   :  { %s69_s10 = smov 21   ;;  %s70_s11 = smov 15   ;;  %vm3_vm0 = vcmask 23552   ;;  %vm9_vm1 = vcmask 195752   ;;  %vm15_vm2 = vcmask 171152   ;;  %vm21_vm3 = vcmask 146552   ;;  %s113_s0 = inlined_call_operand.vmem [shape: f32[8,3], index: 0, kind: input, shape index: {}]   ;;  %s114_s1 = inlined_call_operand.vmem [shape: f32[1,24], index: 1, kind: output, shape index: {}]  }
   0x1   :  { %v55_v0 = vld [vmem:[%s113_s0 + $0x7] sm:$0x1]   ;;  %v57_v1 = vld [vmem:[%s113_s0 + $0x5] sm:$0x1]   ;;  %v56_v2 = vld [vmem:[%s113_s0 + $0x6] sm:$0x1]  }
   0x2   :  { %7 = vrot.lane.b32.xlu0 %v55_v0, %s69_s10  ;;  %19 = vrot.lane.b32.xlu1 %v57_v1, %s70_s11  ;;  %v58_v3 = vld [vmem:[%s113_s0 + $0x4] sm:$0x1]   ;;  %v2_v4 = vld [vmem:[%s113_s0] sm:$0x1]   ;;  %s71_s18 = smov 18   ;;  %s72_s19 = smov 12  }
   0x3   :  { %4 = vst.msk [vmem:[#allocation0] sm:$0x1] %vm3_vm0, %v2_v4   ;;  %v59_v5 = vld [vmem:[%s113_s0 + $0x3] sm:$0x1]   ;;  %v60_v6 = vld [vmem:[%s113_s0 + $0x2] sm:$0x1]  }
   0x4   :  { %s73_s24 = smov 9   ;;  %s74_s25 = smov 6   ;;  %v61_v7 = vld [vmem:[%s113_s0 + $0x1] sm:$0x1]   ;;  %vm27_vm4 = vcmask 121952   ;;  %vm33_vm5 = vcmask 97352  }
   0x5   :  { %s75_s0 = smov 3   ;;  %vm39_vm6 = vcmask 72752   ;;  %vm45_vm7 = vcmask 48152  }
   0x6   :  { %13 = vrot.lane.b32.xlu0 %v56_v2, %s71_s18  ;;  %25 = vrot.lane.b32.xlu1 %v58_v3, %s72_s19 }
   0xa   :  { %31 = vrot.lane.b32.xlu0 %v59_v5, %s73_s24  ;;  %37 = vrot.lane.b32.xlu1 %v60_v6, %s74_s25 }
   0xe   :  { %43 = vrot.lane.b32.xlu0 %v61_v7, %s75_s0 }
  0x74   :  { %v8_v8 = vpop.permute.xlu0 %7   ;;  %v20_v9 = vpop.permute.xlu1 %19  }
  0x75   :  { %10 = vst.msk [vmem:[#allocation0] sm:$0x1] %vm9_vm1, %v8_v8  }
  0x78   :  { %v14_v10 = vpop.permute.xlu0 %13   ;;  %v26_v11 = vpop.permute.xlu1 %25  }
  0x79   :  { %16 = vst.msk [vmem:[#allocation0] sm:$0x1] %vm15_vm2, %v14_v10  }
  0x7a   :  { %22 = vst.msk [vmem:[#allocation0] sm:$0x1] %vm21_vm3, %v20_v9  }
  0x7b   :  { %28 = vst.msk [vmem:[#allocation0] sm:$0x1] %vm27_vm4, %v26_v11  }
  0x7c   :  { %v32_v12 = vpop.permute.xlu0 %31   ;;  %v38_v13 = vpop.permute.xlu1 %37  }
  0x7d   :  { %34 = vst.msk [vmem:[#allocation0] sm:$0x1] %vm33_vm5, %v32_v12  }
  0x7e   :  { %40 = vst.msk [vmem:[#allocation0] sm:$0x1] %vm39_vm6, %v38_v13  }
  0x80   :  { %v44_v14 = vpop.permute.xlu0 %43  }
  0x81   :  { %46 = vst.msk [vmem:[#allocation0] sm:$0x1] %vm45_vm7, %v44_v14  }
  0x88   :  { %v51_v15 = vld [vmem:[#allocation0] sm:$0x1] }
  0x89   :  { %54 = vst [vmem:[%s114_s1] sm:$0x1] %v51_v15 }

// kernel: pointset_cnn_forward.1
= control target key start
LH: loop header
LB: loop body
LE: loop exit
PB: predicated region body
PF: predicated region fallthrough
CT: control target
= control target key end

     0   :  { %s1236_s19 = smov 0   ;;  %s1238_s20 = smov 0   ;;  %s1364_s0 = inlined_call_operand.vmem [shape: f32[2,64,128], index: 0, kind: input, shape index: {}]   ;;  %s1365_s1 = inlined_call_operand.vmem [shape: bf16[128,24], index: 1, kind: input, shape index: {}]   ;;  %s1366_s2 = inlined_call_operand.vmem [shape: f32[1,24], index: 2, kind: input, shape index: {}]   ;;  %s1367_s3 = inlined_call_operand.vmem [shape: f32[24,24], index: 3, kind: input, shape index: {}]   ;;  %s1368_s4 = inlined_call_operand.vmem [shape: f32[1,24], index: 4, kind: input, shape index: {}]   ;;  %s1369_s5 = inlined_call_operand.vmem [shape: f32[24,3], index: 5, kind: input, shape index: {}]   ;;  %s1370_s6 = inlined_call_operand.vmem [shape: f32[3,3], index: 6, kind: input, shape index: {}]   ;;  %s1371_s7 = inlined_call_operand.vmem [shape: f32[1,3], index: 7, kind: input, shape index: {}]   ;;  %s1372_s8 = inlined_call_operand.vmem [shape: f32[3,1], index: 8, kind: input, shape index: {}]   ;;  %s1373_s9 = inlined_call_operand.<no memory space> [shape: f32[1,1], index: 9, kind: input, shape index: {}]   ;;  %s1374_s10 = inlined_call_operand.vmem [shape: s32[1,24], index: 10, kind: input, shape index: {}]   ;;  %s1375_s11 = inlined_call_operand.vmem [shape: f32[2,8,128], index: 11, kind: output, shape index: {}]  }
   0x1   :  { %v16_v0 = vstv %s1373_s9  ;;  %s1240_s21 = smov 0   ;;  %s1242_s22 = smov 0  }
   0x2   :  { %17 = vst [vmem:[#allocation3] sm:$0x1] %v16_v0  ;;  %s1244_s23 = smov 0  }
   0x3 LB: > { %s32_s9 = sadd.s32 1, %s1158_s21  ;;  %s35_s10 = sadd.s32 1, %s1162_s22  ;;  %s1166_s23 = sphi %s1244_s23, %s23_s23   ;;  %s1162_s22 = sphi %s1242_s22, %s1379_s22   ;;  %s1158_s21 = sphi %s1240_s21, %s1378_s21   ;;  %s1154_s20 = sphi %s1238_s20, %s1377_s20   ;;  %s1150_s19 = sphi %s1236_s19, %s1376_s19  }
   0x4   : > { %p33_p0 = scmp.ge.s32.totalorder %s32_s9, 4  ;;  %p972_p1 = scmp.ge.s32.totalorder %s1166_s23, 1 }
   0x5   : > { %p358_p2 = scmp.lt.s32.totalorder %s1166_s23, 9 }
   0x6   : > { %s1381_s9 = smov (%p33_p0, %s32_s9), 0  ;;  %s1383_s10 = smov (!%p33_p0, %s35_s10), %s1162_s22 }
   0x7   : > { %p359_p3 = pnand %p972_p1, %p358_p2  ;;  %p37_p4 = scmp.ge.s32.totalorder %s1383_s10, 2 }
   0x8   : > { %s973_s24 = sshll.u32 (!%p359_p3), %s1150_s19, 1  ;;  %p402_p5 = scmp.lt.s32.totalorder (!%p359_p3), %s1154_s20, 1 }
   0x9   : > { %s1385_s10 = smov (%p37_p4, %s1383_s10), 0  ;;  %362 = sbr.rel (%p359_p3) target bundleno = 1151 (0x47f), region = 64 }
   0xa   : > { %p404_p6 = scmp.lt.s32.totalorder (!%p359_p3), %s973_s24, 7  ;;  %p977_p7 = scmp.ne.s32.totalorder (!%p359_p3), %s1150_s19, 0 }
   0xe   : > { %s1387_s20 = smov (!%p402_p5, %s1154_s20), 1  ;;  %s1389_s24 = smov (!%p404_p6, %s973_s24), 7 }
   0xf   : > { %s974_s25 = sshll.u32 %s1387_s20, 3  ;;  %419 = sbr.rel (%p977_p7) target bundleno = 22 (0x16), region = 68 }
  0x10   : > { %s407_s26 = sadd.s32 %s974_s25, %s1389_s24  ;;  %s1272_s29 = scalar_lea.vmem %s1375_s11, %s974_s25 }
  0x11   : > { %s975_s30 = sshll.u32 %s407_s26, 3 }
  0x12   : > { %s1277_s14 = scalar_lea.vmem %s1364_s0, %s975_s30 }
  0x14   : > { %vm420_vm0 = vcmask 188416   ;;  %v1168_v1 = vmov 0.0  }
  0x15   : > { %421 = vst.msk [vmem:[#allocation2] sm:$0x1] %vm420_vm0, %v1168_v1 }
  0x16 PF: > { %v1116_v2 = vld [vmem:[%s1365_s1 + $0x38] sm:$0xff]   ;;  %v1169_v3 = vmov 0.0   ;;  %v1117_v4 = vld [vmem:[%s1365_s1 + $0x30] sm:$0xff]   ;;  %vm1170_vm1 = vmmov 0   ;;  %v1118_v5 = vld [vmem:[%s1365_s1 + $0x28] sm:$0xff]   ;;  %vm549_vm2 = vcmask 195584  }
  0x17   : > { %1021 = vmatprep.subr.bf16.mxu0 %v1169_v3  ;;  %1037 = vmatprep.mubr.msk.bf16.mxu0 %vm1170_vm1, %v1169_v3  ;;  %v1119_v6 = vld [vmem:[%s1365_s1 + $0x20] sm:$0xff]   ;;  %v1120_v7 = vld [vmem:[%s1365_s1 + $0x18] sm:$0xff]   ;;  %v1121_v8 = vld [vmem:[%s1365_s1 + $0x10] sm:$0xff]   ;;  %vm644_vm3 = vcmask 188416   ;;  %p990_p8 = scmp.ne.s32.totalorder %s1150_s19, 3 }
  0x18   : > { %1022 = vmatpush3.bf16.msra.mxu0 %v1116_v2  ;;  %v1122_v9 = vld [vmem:[%s1365_s1 + $0x8] sm:$0xff]   ;;  %v1123_v10 = vld [vmem:[%s1365_s1] sm:$0xff]   ;;  %v541_v14 = vld [vmem:[%s1367_s3 + $0x10] sm:$0xff] }
  0x19   : > { %1023 = vmatprep.subr.bf16.mxu0 %v1169_v3  ;;  %v422_v11 = vld [vmem:[%s1277_s14] sm:$0xff]  ;;  %v423_v12 = vld [vmem:[%s1277_s14 + $0x8] sm:$0xff]  ;;  %1041 = vmatprep.subr.mxu1 %v541_v14 }
  0x1a   : > { %v424_v13 = vpack.c.bf16 %v423_v12, %v422_v11  ;;  %1042 = vmatpush3.msra.mxu1 %v541_v14  ;;  %v540_v15 = vld [vmem:[%s1367_s3 + $0x8] sm:$0xff]  ;;  %v539_v16 = vld [vmem:[%s1367_s3] sm:$0xff] }
  0x1b   : > { %1043 = vmatprep.subr.mxu1 %v540_v15  ;;  %v978_v17 = vld [vmem:[%s1366_s2] ss:$0 sm:$0xff] }
  0x1c   : > { %1024 = vmatpush3.bf16.msra.mxu0 %v1117_v4  ;;  %1044 = vmatpush3.msra.mxu1 %v540_v15  ;;  %v987_v26 = vld [vmem:[%s1368_s4] ss:$0 sm:$0xff] }
  0x1d   : > { %1025 = vmatprep.subr.bf16.mxu0 %v1169_v3  ;;  %1045 = vmatprep.subr.mxu1 %v539_v16  ;;  %v633_v41 = vld [vmem:[#allocation2] sm:$0x1] }
  0x1e   : > { %1046 = vmatpush3.msra.mxu1 %v539_v16 }
  0x20   : > { %1026 = vmatpush3.bf16.msra.mxu0 %v1118_v5 }
  0x21   : > { %1027 = vmatprep.subr.bf16.mxu0 %v1169_v3 }
  0x24   : > { %1028 = vmatpush3.bf16.msra.mxu0 %v1119_v6 }
  0x25   : > { %1029 = vmatprep.subr.bf16.mxu0 %v1169_v3 }
  0x28   : > { %1030 = vmatpush3.bf16.msra.mxu0 %v1120_v7 }
  0x29   : > { %1031 = vmatprep.subr.bf16.mxu0 %v1169_v3 }
  0x2c   : > { %1032 = vmatpush3.bf16.msra.mxu0 %v1121_v8 }
  0x2d   : > { %1033 = vmatprep.subr.bf16.mxu0 %v1169_v3 }
  0x30   : > { %1034 = vmatpush3.bf16.msra.mxu0 %v1122_v9 }
  0x31   : > { %1035 = vmatprep.subr.bf16.mxu0 %v1169_v3 }
  0x34   : > { %1036 = vmatpush3.bf16.msra.mxu0 %v1123_v10 }
  0x37   : > { %1038 = vmatmul.mubr.bf16.vlgmr.msra.gmra.mxu0 %v424_v13 }
  0xf7   : > { %v530_v18 = vpop.f32.mrf.mxu0 }
  0xf8   : > { %v531_v19 = vadd.f32 %v978_v17, %v530_v18 }
  0xf9   : > { %v1039_v20 = vpop.f32.mrf.mxu0 }
  0xfa   : > { %v537_v21 = vmax.f32 %v531_v19, 0.0 }
  0xfb   : > { %v533_v22 = vpop.f32.mrf.mxu0 }
  0xfc   : > { %v534_v23 = vadd.f32 %v978_v17, %v533_v22  ;;  %1047 = vmatprep.mubr.msk.f32.mxu1 %vm549_vm2, %v537_v21 }
  0xfd   : > { %v1040_v24 = vpop.f32.mrf.mxu0 }
  0xfe   : > { %v538_v25 = vmax.f32 %v534_v23, 0.0 }
 0x100   : > { %1048 = vmatmul.mubr.msk.f32.vlgmr.msra.gmra.mxu1 %vm549_vm2, %v538_v25 }
 0x1c0   : > { %v1049_v27 = vpop.f32.mrf.mxu1 }
 0x1c1   : > { %v628_v28 = vadd.f32 %v1049_v27, %v987_v26 }
 0x1c2   : > { %v622_v29 = vpop.f32.mrf.mxu1 }
 0x1c3   : > { %v632_v30 = vmax.f32 %v628_v28, 0.0  ;;  %v623_v31 = vadd.f32 %v987_v26, %v622_v29 }
 0x1c5   : > { %v631_v32 = vmax.f32 %v623_v31, 0.0  ;;  %v635_v33 = vsel %vm549_vm2, %v632_v30, 0.0 }
 0x1c7   : > { %v634_v34 = vsel %vm549_vm2, %v631_v32, 0.0 }
 0x1c8   : > { %v636_v35 = vadd.f32 %v635_v33, %v634_v34 }
 0x1ca   : > { %v637_v36 = vrot.slane %v636_v35, 4 }
 0x1cc   : > { %v638_v37 = vadd.f32 %v637_v36, %v636_v35 }
 0x1ce   : > { %v639_v38 = vrot.slane %v638_v37, 2 }
 0x1d0   : > { %v640_v39 = vadd.f32 %v639_v38, %v638_v37 }
 0x1d2   : > { %v641_v40 = vrot.slane %v640_v39, 1 }
 0x1d4   : > { %v642_v42 = vadd.f32 %v641_v40, %v640_v39  ;;  %649 = sbr.rel (%p990_p8) target bundleno = 1151 (0x47f), region = 72 }
 0x1d6   : > { %v643_v43 = vadd.f32 %v642_v42, %v633_v41 }
 0x1d8   : > { %645 = vst.msk [vmem:[#allocation2] sm:$0x1] %vm644_vm3, %v643_v43 }
 0x1d9   : > { %v653_v44 = vld [vmem:[%s1369_s5 + $0x10] sm:$0xff]  ;;  %v1171_v45 = vmov 0.0   ;;  %v652_v46 = vld [vmem:[%s1369_s5 + $0x8] sm:$0xff]  ;;  %vm1172_vm4 = vmmov 0   ;;  %v651_v47 = vld [vmem:[%s1369_s5] sm:$0xff]  ;;  %vm734_vm5 = vcmask 1042432  }
 0x1da   : > { %1050 = vmatprep.subr.mxu0 %v1171_v45  ;;  %1056 = vmatprep.mubr.msk.f32.mxu0 %vm1172_vm4, %v1171_v45  ;;  %v728_v49 = vld [vmem:[%s1370_s6] sm:$0x7]  ;;  %vm730_vm6 = vcmask 23552  }
 0x1db   : > { %1051 = vmatpush3.msra.mxu0 %v653_v44  ;;  %1059 = vmatprep.subr.mxu1 %v1171_v45  ;;  %v809_v53 = vld [vmem:[%s1372_s8] sm:$0x7] }
 0x1dc   : > { %1052 = vmatprep.subr.mxu0 %v1171_v45  ;;  %1061 = vmatprep.mubr.msk.f32.mxu1 %vm1172_vm4, %v1171_v45  ;;  %v729_v54 = vld [vmem:[%s1371_s7] sm:$0x1]  ;;  %v810_v59 = vld [vmem:[#allocation3] sm:$0x1] }
 0x1dd   : > { %1053 = vmatpush3.msra.mxu0 %v652_v46  ;;  %1060 = vmatpush3.msk.msra.mxu1 %vm734_vm5, %v728_v49 }
 0x1de   : > { %1054 = vmatprep.subr.mxu0 %v1171_v45  ;;  %1064 = vmatprep.subr.mxu1 %v1171_v45 }
 0x1df   : > { %v650_v48 = vld [vmem:[#allocation2] sm:$0x1]  ;;  %1055 = vmatpush3.msra.mxu0 %v651_v47 }
 0x1e0   : > { %1057 = vmatmul.mubr.msk.f32.vlgmr.msra.gmra.mxu0 %vm549_vm2, %v650_v48 }
 0x2a0   : > { %v723_v50 = vpop.f32.mrf.mxu0 }
 0x2a1   : > { %v727_v51 = vmul.f32 0.001953125, %v723_v50 }
 0x2a2   : > { %v1058_v52 = vpop.f32.mrf.mxu0 }
 0x2a3   : > { %1062 = vmatmul.mubr.msk.f32.vlgmr.msra.gmra.mxu1 %vm730_vm6, %v727_v51 }
 0x2a4   : > { %1066 = vmatprep.mubr.msk.f32.mxu1 %vm1172_vm4, %v1171_v45  ;;  %1065 = vmatpush3.msk.msra.mxu1 %vm734_vm5, %v809_v53 }
 0x363   : > { %v804_v55 = vpop.f32.mrf.mxu1 }
 0x364   : > { %v805_v56 = vadd.f32 %v804_v55, %v729_v54 }
 0x365   : > { %v1063_v57 = vpop.f32.mrf.mxu1 }
 0x366   : > { %v808_v58 = vmax.f32 %v805_v56, 0.0 }
 0x368   : > { %1067 = vmatmul.mubr.msk.f32.vlgmr.msra.gmra.mxu1 %vm730_vm6, %v808_v58 }
 0x428   : > { %v883_v60 = vpop.f32.mrf.mxu1 }
 0x429   : > { %v884_v61 = vadd.f32 %v883_v60, %v810_v59 }
 0x42a   : > { %v1068_v62 = vpop.f32.mrf.mxu1 }
 0x42b   : > { %v996_v63 = vmul.f32 -1.442695, %v884_v61 }
 0x42d   : > { %1124 = vpow2.f32 %v996_v63 }
 0x43a   : > { %v1125_v0 = vpop.eup %1124 }
 0x43b   : > { %v890_v1 = vadd.f32 1.0, %v1125_v0 }
 0x43d   : > { %1126 = vrcp.f32 %v890_v1 }
 0x44a   : > { %v1127_v2 = vpop.eup %1126 }
 0x44b   : > { %1069 = vpush %v1127_v2 }
 0x47c   : > { %s1070_s28 = spop %1069 }
 0x47d   : > { %v895_v3 = vstv %s1070_s28 }
 0x47e   : > { %897 = vst [vmem:[%s1272_s29] sm:$0xff] %v895_v3 }
 0x47f PF: > { %s23_s23 = sadd.s32 1, %s1166_s23   ;;  %s1376_s19 = smov %s1158_s21 }
 0x480   : > { %p20_p9 = scmp.ge.s32.totalorder %s23_s23, 10   ;;  %s1377_s20 = smov %s1162_s22 }
 0x481   : > { %s1378_s21 = smov %s1381_s9  ;;  %s1379_s22 = smov %s1385_s10 }
 0x482   :  { %22 = sbr.rel (!%p20_p9) target bundleno = 3 (0x3), region = 102 }

</bundles_post_ra>
